<compile_context>
chip_gen: v6e
topology: v6e:2x2x1
jax: 0.10.0
libtpu: 0.0.40
codegen_flags: <defaults>
</compile_context>

<pallas_src>
import jax
import jax.numpy as jnp
from jax.experimental import pallas as pl
from jax.experimental.pallas import tpu as pltpu

_B_MIN = 8           # f32 sublane granularity for the batch tile
_B_MAX = 512         # ~85% of HBM roofline per measured tile sweeps
_LANE = 128          # lane width for the padded class axis
_NEG_BIG = -1.0e30   # bias for padded class lanes -> exp() underflows to 0


def _round_up(n, m):
    return ((n + m - 1) // m) * m


def _choose_batch_block(batch):
    """Large batch tile, but keep >=2 grid steps (v7x: 2 TCs) when B allows."""
    half = _round_up(max(1, -(-batch // 2)), _B_MIN)
    return max(_B_MIN, min(_B_MAX, half))


def _logreg_kernel(x_ref, wt_ref, b_ref, o_ref):
    # x_ref : (blk, D_in)   wt_ref : (D_in, Cpad)   b_ref : (1, Cpad)
    logits = jnp.dot(x_ref[...], wt_ref[...],
                     preferred_element_type=jnp.float32) + b_ref[...]
    # Numerically-stable softmax over the padded (128-lane) class axis.
    # Padded lanes hold -1e30 and vanish after exp().
    mx = jnp.max(logits, axis=-1, keepdims=True)
    e = jnp.exp(logits - mx)
    denom = jnp.sum(e, axis=-1, keepdims=True)
    o_ref[...] = (e / denom).astype(o_ref.dtype)   # exact divide (see header)


def prepare_params(w, b):
    """One-time packing of PyTorch Linear params (hoisted out of the hot path).

    w: (out_features, in_features), b: (out_features,)
    Returns (wt_packed, b_packed) with the class axis padded to 128 lanes.
    """
    n_classes, d_in = w.shape
    n_pad = _round_up(n_classes, _LANE)
    wt = jnp.zeros((d_in, n_pad), jnp.float32).at[:, :n_classes].set(
        jnp.asarray(w, jnp.float32).T)
    bp = jnp.full((1, n_pad), _NEG_BIG, jnp.float32).at[0, :n_classes].set(
        jnp.asarray(b, jnp.float32))
    return wt, bp


def modlogreg_forward(x, wt_packed, b_packed, n_classes, return_scores=False):
    """x: (B, in_features) float32.  Returns softmax(x @ W.T + b)."""
    B, d_in = x.shape
    n_pad = wt_packed.shape[1]

    blk = _choose_batch_block(B)
    grid = (pl.cdiv(B, blk),)   # no batch-pad copy; Pallas masks the tail block

    out_padded = pl.pallas_call(
        _logreg_kernel,
        out_shape=jax.ShapeDtypeStruct((B, n_pad), jnp.float32),
        grid=grid,
        in_specs=[
            pl.BlockSpec((blk, d_in), lambda i: (i, 0)),    # streamed batch tile
            pl.BlockSpec((d_in, n_pad), lambda i: (0, 0)),  # packed W^T (resident)
            pl.BlockSpec((1, n_pad), lambda i: (0, 0)),     # packed bias (resident)
        ],
        out_specs=pl.BlockSpec((blk, n_pad), lambda i: (i, 0)),
        compiler_params=pltpu.CompilerParams(
            dimension_semantics=("parallel",)),             # lets v7x split batch
    )(x, wt_packed, b_packed)

    # Slice out the real classes.  If a downstream op (argmax / NLL) exists,
    # fuse it into the kernel epilogue instead to avoid re-reading the slab.
    out = out_padded[:, :n_classes]
    if return_scores:
        return x, out            # PyTorch module returns (input, softmax(...))
    return out


def reference_forward(x, w, b):
    """Pure-JAX reference matching the PyTorch module (full-precision matmul)."""
    logits = jnp.dot(x, w.T, precision=jax.lax.Precision.HIGHEST) + b
    return jax.nn.softmax(logits, axis=-1)


if __name__ == "__main__":
    B, IN_FEATURES, OUT_FEATURES = 16, 64, 10

    key = jax.random.PRNGKey(0)
    kx, kw, kb = jax.random.split(key, 3)
    x = jax.random.normal(kx, (B, IN_FEATURES), jnp.float32)
    w = 0.1 * jax.random.normal(kw, (OUT_FEATURES, IN_FEATURES), jnp.float32)
    b = 0.1 * jax.random.normal(kb, (OUT_FEATURES,), jnp.float32)

    wt_packed, b_packed = prepare_params(w, b)   # one-time packing

    out = jax.block_until_ready(
        modlogreg_forward(x, wt_packed, b_packed, OUT_FEATURES))
    ref = jax.block_until_ready(reference_forward(x, w, b))

    assert out.shape == (B, OUT_FEATURES)
    assert jnp.allclose(out, ref, atol=1e-4, rtol=1e-4), "mismatch vs JAX reference"
    assert jnp.allclose(jnp.sum(out, axis=-1), 1.0, atol=1e-5), "softmax rows must sum to 1"

    # return_scores=True path matches the PyTorch contract: (input, probabilities)
    xs, probs = modlogreg_forward(x, wt_packed, b_packed, OUT_FEATURES,
                                  return_scores=True)
    assert xs.shape == x.shape and probs.shape == (B, OUT_FEATURES)

    print("KERNEL_OK")
</pallas_src>

<mosaic_0001>
module attributes {stable_mosaic.version = 11 : i64} {
  func.func @_logreg_kernel(%arg0: i32, %arg1: memref<8x64xf32, #tpu.memory_space<vmem>>, %arg2: memref<64x128xf32, #tpu.memory_space<vmem>>, %arg3: memref<1x128xf32, #tpu.memory_space<vmem>>, %arg4: memref<8x128xf32, #tpu.memory_space<vmem>>) attributes {dimension_semantics = [#tpu.dimension_semantics<parallel>], iteration_bounds = array<i64: 2>, scalar_prefetch = 0 : i64, scratch_operands = 0 : i64, tpu.core_type = #tpu.core_type<tc>, window_params = [{transform_indices = @transform_0, window_bounds = array<i64: 8, 64>}, {pipeline_mode = #tpu.pipeline_mode<synchronous>, transform_indices = @transform_1, window_bounds = array<i64: 64, 128>}, {pipeline_mode = #tpu.pipeline_mode<synchronous>, transform_indices = @transform_2, window_bounds = array<i64: 1, 128>}, {transform_indices = @transform_3, window_bounds = array<i64: 8, 128>}]} {
    %c0 = arith.constant 0 : index
    %c0_0 = arith.constant 0 : index
    %0 = vector.load %arg1[%c0, %c0_0] : memref<8x64xf32, #tpu.memory_space<vmem>>, vector<8x64xf32>
    %c0_1 = arith.constant 0 : index
    %c0_2 = arith.constant 0 : index
    %1 = vector.load %arg2[%c0_1, %c0_2] : memref<64x128xf32, #tpu.memory_space<vmem>>, vector<64x128xf32>
    %cst = arith.constant dense<0.000000e+00> : vector<8x128xf32>
    %2 = tpu.matmul %0, %1, %cst {dimension_numbers = #tpu.dot_dimension_numbers<[1], [0], [0], [1], [0, 0, 1, 1], [], []>} : vector<8x64xf32>, vector<64x128xf32>, vector<8x128xf32> -> vector<8x128xf32>
    %c0_3 = arith.constant 0 : index
    %c0_4 = arith.constant 0 : index
    %3 = vector.load %arg3[%c0_3, %c0_4] : memref<1x128xf32, #tpu.memory_space<vmem>>, vector<1x128xf32>
    %4 = vector.broadcast %3 : vector<1x128xf32> to vector<8x128xf32>
    %5 = arith.addf %2, %4 : vector<8x128xf32>
    %cst_5 = arith.constant dense<0xFF800000> : vector<8xf32>
    %6 = vector.multi_reduction <maximumf>, %5, %cst_5 [1] : vector<8x128xf32> to vector<8xf32>
    %7 = vector.shape_cast %6 : vector<8xf32> to vector<8x1xf32>
    %8 = vector.broadcast %7 : vector<8x1xf32> to vector<8x128xf32>
    %9 = arith.subf %5, %8 : vector<8x128xf32>
    %10 = math.exp %9 : vector<8x128xf32>
    %cst_6 = arith.constant dense<0.000000e+00> : vector<8xf32>
    %11 = vector.multi_reduction <add>, %10, %cst_6 [1] : vector<8x128xf32> to vector<8xf32>
    %12 = vector.shape_cast %11 : vector<8xf32> to vector<8x1xf32>
    %13 = vector.broadcast %12 : vector<8x1xf32> to vector<8x128xf32>
    %14 = arith.divf %10, %13 : vector<8x128xf32>
    %c0_7 = arith.constant 0 : index
    %c0_8 = arith.constant 0 : index
    %15 = vector.load %arg4[%c0_7, %c0_8] : memref<8x128xf32, #tpu.memory_space<vmem>>, vector<8x128xf32>
    tpu.vector_store %arg4[%c0_7, %c0_8], %14 {strides = array<i32>} : memref<8x128xf32, #tpu.memory_space<vmem>>, vector<8x128xf32>,
    return
  }
  func.func @transform_0(%arg0: i32) -> (i32, i32) {
    %c0_i32 = arith.constant 0 : i32
    %c0_i32_0 = arith.constant 0 : i32
    return %arg0, %c0_i32 : i32, i32
  }
  func.func @transform_1(%arg0: i32) -> (i32, i32) {
    %c0_i32 = arith.constant 0 : i32
    %c0_i32_0 = arith.constant 0 : i32
    %c0_i32_1 = arith.constant 0 : i32
    return %c0_i32, %c0_i32_0 : i32, i32
  }
  func.func @transform_2(%arg0: i32) -> (i32, i32) {
    %c0_i32 = arith.constant 0 : i32
    %c0_i32_0 = arith.constant 0 : i32
    %c0_i32_1 = arith.constant 0 : i32
    return %c0_i32, %c0_i32_0 : i32, i32
  }
  func.func @transform_3(%arg0: i32) -> (i32, i32) {
    %c0_i32 = arith.constant 0 : i32
    %c0_i32_0 = arith.constant 0 : i32
    return %arg0, %c0_i32 : i32, i32
  }
}

</mosaic_0001>

<bundles_post_ra>
// kernel: tpu_custom_call.1
= control target key start
LH: loop header
LB: loop body
LE: loop exit
PB: predicated region body
PF: predicated region fallthrough
CT: control target
= control target key end

     0   :  { %8 = vsyncpa [#allocation3], 0  ;;  %s816_s0 = inlined_call_operand.hbm [shape: f32[16,64], index: 0, kind: input, shape index: {}]   ;;  %s817_s1 = inlined_call_operand.hbm [shape: f32[64,128], index: 1, kind: input, shape index: {}]   ;;  %s818_s2 = inlined_call_operand.vmem [shape: f32[1,128], index: 2, kind: input, shape index: {}]   ;;  %s819_s3 = inlined_call_operand.hbm [shape: f32[16,128], index: 3, kind: output, shape index: {}]  }
   0x1   :  { %10 = vsyncpa [#allocation3 + $0x1], 0 }
   0x2   :  { %11 = vsyncpa [#allocation6], 0 }
   0x3   :  { %12 = vsyncpa [#allocation4], 0 }
   0x4   :  { %14 = vsyncpa [#allocation4 + $0x1], 0  ;;  %s655_s12 = smov 0   ;;  %s657_s13 = smov 0  }
   0x5   :  { %s659_s14 = smov 0   ;;  %s661_s15 = smov 0  }
   0x6 LB: > { %s676_s16 = sadd.s32 4294967295, %s626_s15   ;;  %s395_s17 = sadd.s32 4294967294, %s626_s15   ;;  %s626_s15 = sphi %s661_s15, %s841_s15   ;;  %s622_s14 = sphi %s659_s14, %s840_s14   ;;  %s618_s13 = sphi %s657_s13, %s839_s13   ;;  %s614_s12 = sphi %s655_s12, %s838_s12  }
   0x7   : > { %p40_p0 = scmp.ne.s32.totalorder %s618_s13, %s614_s12  ;;  %p820_p1 = scmp.eq.s32.totalorder %s676_s16, 0 }
   0x8   : > { %p112_p3 = scmp.eq.s32.totalorder %s395_s17, 1  ;;  %p396_p5 = scmp.ge.s32.totalorder %s626_s15, 1 }
   0x9   : > { %p685_p4 = por %p820_p1, %p40_p0  ;;  %p119_p7 = scmp.lt.s32.totalorder %s626_s15, 3 }
   0xa   : > { %p690_p6 = por %p112_p3, %p40_p0  ;;  %s628_s21 = smov [#allocation5]  }
   0xb   : > { %s824_s18 = scalar_select %p685_p4, 1, 0 }
   0xc   : > { %s825_s19 = scalar_select %p690_p6, 1, 0 }
   0xd   : > { %p695_p8 = pnand %p396_p5, %p119_p7  ;;  %s131_s22 = sshll.u32 %s628_s21, 4  ;;  %s132_s22 = int_to_ptr.vmem [resolvable:$true] %s131_s22 }
   0xe   : > { %s709_s24 = sadd.s32 1, %s626_s15   ;;  %s27_s25 = sadd.s32 1, %s622_s14 }
   0xf   : > { %s826_s20 = scalar_select %p695_p8, 1, 0 }
  0x10   : > { %p447_p9 = pneg %p695_p8  ;;  %s24_s26 = ssub.s32 %s626_s15, %s709_s24 }
  0x11   : > { %s515_s27 = scalar_lea.vmem %s132_s22, 1024  ;;  %p523_p5 = scmp.lt.s32.totalorder %s132_s22, %s132_s22 }
  0x12   : > { %p704_p11 = pnand %p447_p9, %p820_p1  ;;  %p516_p13 = scmp.ne.s32.totalorder %s132_s22, %s515_s27 }
  0x13   : > { %p524_p7 = scmp.lt.s32.totalorder %s515_s27, %s515_s27 }
  0x14   : > { %p506_p12 = pneg %p704_p11 }
  0x15   : > { %p525_p10 = por %p524_p7, %p523_p5 }
  0x16   : > { %p518_p0 = pnand %p516_p13, %p506_p12 }
  0x18   : > { %p519_p3 = pneg %p518_p0 }
  0x1a   : > { %p526_p2 = pnand %p525_p10, %p519_p3 }
  0x1c   : > { %529 = shalt.err (!%p526_p2)
}
  0x1d   : > { %s629_s28 = smov 128   ;;  %s630_s29 = smov 8  }
  0x1e   : > { %450 = dma.hbm_to_vmem [thread:$0]  (!%p704_p11), %s817_s1, 1024, %s132_s22, [#allocation6], %s629_s28, %s629_s28, %s630_s29  }
  0x1f   : > { %p25_p9 = scmp.eq.s32.totalorder %s24_s26, 0  ;;  %p34_p12 = scmp.ne.s32.totalorder %s622_s14, %s618_s13 }
  0x20   : > { %p35_p10 = scmp.eq.s32.totalorder %s626_s15, 0  ;;  %p460_p2 = scmp.lt.s32.totalorder %s626_s15, 2 }
  0x21   : > { %s726_s5 = scalar_select %p25_p9, %s622_s14, %s27_s25  }
  0x22   : > { %p36_p13 = por %p35_p10, %p34_p12  ;;  %p828_p0 = scmp.eq.s32.totalorder %s676_s16, 1 }
  0x23   : > { %s148_s7 = sand.u32 1, %s622_s14   ;;  %s400_s8 = sshll.u32 %s626_s15, 7 }
  0x24   : > { %p730_p3 = por %p828_p0, %p34_p12  ;;  %s399_s9 = sshll.u32 %s148_s7, 3 }
  0x25   : > { %s739_s17 = scalar_lea.hbm %s816_s0, %s400_s8  ;;  %s152_s21 = scalar_lea.vmem [#allocation2], %s399_s9 }
  0x26   : > { %s829_s6 = scalar_select %p730_p3, 1, 0 }
  0x27   : > { %s159_s22 = sshll.u32 %s152_s21, 4  ;;  %p741_p11 = pnand %p460_p2, %p36_p13  ;;  %s160_s22 = int_to_ptr.vmem [resolvable:$true] %s159_s22 }
  0x28   : > { %s149_s25 = scalar_lea.sflag [#allocation3], %s148_s7  ;;  %s530_s26 = scalar_lea.hbm %s739_s17, 128 }
  0x29   : > { %p531_p5 = scmp.ne.s32.totalorder %s739_s17, %s530_s26  ;;  %p532_p7 = pneg %p741_p11 }
  0x2a   : > { %s535_s29 = scalar_lea.hbm %s816_s0, 256  ;;  %p536_p10 = scmp.lt.s32.totalorder %s739_s17, %s816_s0 }
  0x2b   : > { %p533_p9 = pnand %p532_p7, %p531_p5  ;;  %p537_p2 = scmp.lt.s32.totalorder %s535_s29, %s530_s26 }
  0x2d   : > { %p534_p12 = pneg %p533_p9  ;;  %p538_p13 = por %p537_p2, %p536_p10 }
  0x2f   : > { %p539_p0 = pnand %p538_p13, %p534_p12 }
  0x31   : > { %542 = shalt.err (!%p539_p0)
}
  0x32   : > { %s543_s8 = scalar_lea.vmem %s160_s22, 128  ;;  %s631_s7 = smov [#allocation2]  }
  0x33   : > { %p544_p1 = scmp.ne.s32.totalorder %s160_s22, %s543_s8  ;;  %s548_s9 = sshll.u32 %s631_s7, 4  ;;  %s549_s9 = int_to_ptr.vmem [resolvable:$false] %s548_s9 }
  0x34   : > { %s550_s10 = scalar_lea.vmem %s549_s9, 256  ;;  %p551_p5 = scmp.lt.s32.totalorder %s160_s22, %s549_s9 }
  0x35   : > { %p546_p6 = pnand %p544_p1, %p532_p7  ;;  %p552_p9 = scmp.lt.s32.totalorder %s550_s10, %s543_s8 }
  0x37   : > { %p547_p3 = pneg %p546_p6  ;;  %p553_p4 = por %p552_p9, %p551_p5 }
  0x39   : > { %p554_p8 = pnand %p553_p4, %p547_p3 }
  0x3b   : > { %557 = shalt.err (!%p554_p8)
}
  0x3c   : > { %454 = dma.hbm_to_vmem [thread:$0]  (!%p741_p11), %s739_s17, 128, %s160_s22, %s149_s25  }
  0x3d   : > { %p831_p12 = scmp.ne.s32.totalorder %s826_s20, 0 }
  0x3e   : > { %s762_s11 = sand.u32 (!%p831_p12), 1, %s618_s13   ;;  %p832_p1 = scmp.ne.s32.totalorder (!%p831_p12), %s824_s18, 0 }
  0x3f   : > { %168 = sbr.rel (%p831_p12) target bundleno = 607 (0x25f), region = 32  ;;  %s402_s21 = sshll.u32 (!%p831_p12), %s762_s11, 3 }
  0x40   : > { %s171_s26 = scalar_lea.sflag (!%p831_p12), [#allocation3], %s762_s11  ;;  %s174_s27 = scalar_lea.vmem (!%p831_p12), [#allocation2], %s402_s21 }
  0x44   : > { %601 = dma.done.wait (%p832_p1), %s171_s26, 128  }
  0x45   : > { %603 = vsyncadd (%p832_p1), %s171_s26, 4294967168  ;;  %p833_p4 = scmp.eq.s32.totalorder %s676_s16, 0 }
  0x47   : > { %605 = dma.done.wait (%p833_p4), [#allocation6], 1024   ;;  %p834_p6 = pmov %p833_p4 }
  0x48   : > { %v632_v0 = vmov 0.0   ;;  %vm633_vm0 = vmmov 0   ;;  %v209_v1 = vld [vmem:[#allocation5 + $0x38] sm:$0xff]  ;;  %v208_v2 = vld [vmem:[#allocation5 + $0x30] sm:$0xff]  ;;  %v207_v3 = vld [vmem:[#allocation5 + $0x28] sm:$0xff]  ;;  %vm217_vm1 = vcmask 523264  }
  0x49   : > { %607 = vsyncadd (%p834_p6), [#allocation6], 4294966272  ;;  %420 = vmatprep.subr.mxu0 %v632_v0  ;;  %436 = vmatprep.mubr.msk.f32.mxu0 %vm633_vm0, %v632_v0  ;;  %v206_v4 = vld [vmem:[#allocation5 + $0x20] sm:$0xff]  ;;  %v205_v5 = vld [vmem:[#allocation5 + $0x18] sm:$0xff]  ;;  %s408_s17 = sshll.u32 %s676_s16, 7  ;;  %s200_s22 = scalar_lea.vmem [#allocation7], %s402_s21 }
  0x4a   : > { %421 = vmatpush3.msra.mxu0 %v209_v1  ;;  %v204_v6 = vld [vmem:[#allocation5 + $0x10] sm:$0xff]  ;;  %v203_v7 = vld [vmem:[#allocation5 + $0x8] sm:$0xff]  ;;  %v202_v8 = vld [vmem:[#allocation5] sm:$0xff]  ;;  %s315_s23 = sshll.u32 %s200_s22, 4  ;;  %s313_s29 = scalar_lea.hbm %s819_s3, %s408_s17  ;;  %s316_s23 = int_to_ptr.vmem [resolvable:$true] %s315_s23 }
  0x4b   : > { %422 = vmatprep.subr.mxu0 %v632_v0  ;;  %v201_v9 = vld [vmem:[%s174_s27] sm:$0xff]  ;;  %s302_s30 = scalar_lea.sflag [#allocation4], %s762_s11  ;;  %s558_s4 = scalar_lea.vmem %s316_s23, 128 }
  0x4c   : > { %423 = vmatpush3.msra.mxu0 %v208_v2  ;;  %v405_v10 = vld [vmem:[%s818_s2] ss:$0 sm:$0xff]  ;;  %p559_p8 = scmp.ne.s32.totalorder %s316_s23, %s558_s4  ;;  %p835_p3 = scmp.ne.s32.totalorder %s829_s6, 0 }
  0x4d   : > { %424 = vmatprep.subr.mxu0 %v632_v0  ;;  %s634_s8 = smov [#allocation7]  }
  0x4e   : > { %425 = vmatpush3.msra.mxu0 %v207_v3  ;;  %p560_p11 = pnand %p559_p8, %p835_p3  ;;  %s562_s7 = sshll.u32 %s634_s8, 4  ;;  %s563_s7 = int_to_ptr.vmem [resolvable:$false] %s562_s7 }
  0x4f   : > { %426 = vmatprep.subr.mxu0 %v632_v0  ;;  %s564_s16 = scalar_lea.vmem %s563_s7, 256  ;;  %p565_p10 = scmp.lt.s32.totalorder %s316_s23, %s563_s7 }
  0x50   : > { %427 = vmatpush3.msra.mxu0 %v206_v4  ;;  %p561_p7 = pneg %p560_p11  ;;  %p566_p2 = scmp.lt.s32.totalorder %s564_s16, %s558_s4 }
  0x51   : > { %428 = vmatprep.subr.mxu0 %v632_v0 }
  0x52   : > { %429 = vmatpush3.msra.mxu0 %v205_v5  ;;  %p567_p13 = por %p566_p2, %p565_p10 }
  0x53   : > { %430 = vmatprep.subr.mxu0 %v632_v0 }
  0x54   : > { %431 = vmatpush3.msra.mxu0 %v204_v6  ;;  %p568_p0 = pnand %p567_p13, %p561_p7 }
  0x55   : > { %432 = vmatprep.subr.mxu0 %v632_v0 }
  0x56   : > { %433 = vmatpush3.msra.mxu0 %v203_v7 }
  0x57   : > { %434 = vmatprep.subr.mxu0 %v632_v0 }
  0x58   : > { %435 = vmatpush3.msra.mxu0 %v202_v8 }
  0x59   : > { %437 = vmatmul.mubr.msk.f32.vlgmr.msra.gmra.mxu0 %vm217_vm1, %v201_v9 }
 0x119   : > { %v287_v11 = vpop.f32.mrf.mxu0 }
 0x11a   : > { %v288_v12 = vadd.f32 %v405_v10, %v287_v11 }
 0x11b   : > { %v438_v13 = vpop.f32.mrf.mxu0 }
 0x11c   : > { %291 = vmax.xlane.f32.xlu0 %v288_v12 }
 0x1a5   : > { %v292_v14 = vpop.xlane.xlu0 %291 }
 0x1a6   : > { %v293_v15 = vsub.f32 %v288_v12, %v292_v14 }
 0x1a8   : > { %v294_v16 = vmul.f32 1.442695, %v293_v15 }
 0x1aa   : > { %500 = vpow2.f32 %v294_v16 }
 0x1b7   : > { %v501_v17 = vpop.eup %500 }
 0x1b8   : > { %296 = vadd.xlane.f32.xlu0 %v501_v17 }
 0x241   : > { %v297_v18 = vpop.xlane.xlu0 %296 }
 0x242   : > { %502 = vrcp.f32 %v297_v18 }
 0x24f   : > { %v503_v19 = vpop.eup %502 }
 0x250   : > { %v299_v20 = vmul.f32 %v503_v19, %v501_v17 }
 0x252   : > { %300 = vst [vmem:[%s200_s22] sm:$0xff] %v299_v20 }
 0x253   : > { %571 = shalt.err (!%p568_p0)
}
 0x254   : > { %s572_s9 = scalar_lea.hbm %s313_s29, 128  ;;  %s576_s21 = scalar_lea.hbm %s819_s3, 256 }
 0x255   : > { %p573_p5 = scmp.ne.s32.totalorder %s313_s29, %s572_s9  ;;  %p577_p1 = scmp.lt.s32.totalorder %s313_s29, %s819_s3 }
 0x256   : > { %p578_p4 = scmp.lt.s32.totalorder %s576_s21, %s572_s9 }
 0x257   : > { %p574_p9 = pnand %p573_p5, %p835_p3 }
 0x258   : > { %p579_p6 = por %p578_p4, %p577_p1 }
 0x259   : > { %p575_p12 = pneg %p574_p9 }
 0x25b   : > { %p580_p8 = pnand %p579_p6, %p575_p12 }
 0x25d   : > { %583 = shalt.err (!%p580_p8)
}
 0x25e   : > { %445 = dma.vmem_to_hbm [thread:$0]  (%p835_p3), %s316_s23, 128, %s313_s29, %s302_s30  }
 0x25f PF: > { %s327_s18 = sand.u32 1, %s614_s12   ;;  %p836_p11 = scmp.ne.s32.totalorder %s825_s19, 0 }
 0x260   : > { %p837_p7 = scmp.ge.s32.totalorder %s626_s15, 2  ;;  %s328_s20 = scalar_lea.sflag [#allocation4], %s327_s18 }
 0x262   : > { %p456_p10 = pnand %p837_p7, %p836_p11 }
 0x264   : > { %p457_p2 = pneg %p456_p10 }
 0x266   : > { %609 = dma.done.wait (%p457_p2), %s328_s20, 128  }
 0x267   : > { %611 = vsyncadd (%p457_p2), %s328_s20, 4294967168  ;;  %p17_p13 = scmp.ge.s32.totalorder %s709_s24, 4   ;;  %s838_s12 = smov %s618_s13 }
 0x268   : > { %s839_s13 = smov %s622_s14  ;;  %s840_s14 = smov %s726_s5 }
 0x269   : > { %s841_s15 = smov %s709_s24  ;;  %19 = sbr.rel (!%p17_p13) target bundleno = 6 (0x6), region = 81 }
 0x26e   :  { %333 = vsyncpa [#allocation3], 1 }
 0x26f   :  { %335 = vsyncpa [#allocation3 + $0x1], 1 }
 0x270   :  { %336 = vsyncpa [#allocation6], 1 }
 0x271   :  { %337 = vsyncpa [#allocation4], 1 }
 0x272   :  { %339 = vsyncpa [#allocation4 + $0x1], 1 }

</bundles_post_ra>
